<compile_context>
chip_gen: v6e
topology: v6e:2x2x1
jax: 0.10.0
libtpu: 0.0.40
codegen_flags: <defaults>
</compile_context>

<pallas_src>
import math

import jax
import jax.numpy as jnp
from jax.experimental import pallas as pl
from jax.experimental.pallas import tpu as pltpu


def _round_up(x, m):
    return ((x + m - 1) // m) * m


# ----------------------------- fused Pallas kernel -----------------------------

def _make_decoder_kernel(num_layers, hidden, num_emb_pad, batch_pad):
    H = hidden

    def kernel(caps_ref, emb_ref, h0_ref, *args):
        n_layer_refs = 2 * num_layers
        layer_refs = args[:n_layer_refs]
        fcw_ref, fcb_ref = args[n_layer_refs], args[n_layer_refs + 1]
        preds_ref, hid_ref = args[n_layer_refs + 2], args[n_layer_refs + 3]

        # ---- embedding gather, fused: one-hot(ids) @ table on the MXU (bf16) ----
        # TODO(synk): at realistic num_embeddings, replace with scalar-prefetched
        # ids (SMEM) + per-row make_async_copy DMA gather from an HBM-resident
        # table (memory_space=pl.ANY) instead of keeping the whole table in VMEM.
        ids = caps_ref[...]                                                   # (Bp, 1) int32
        col = jax.lax.broadcasted_iota(jnp.int32, (batch_pad, num_emb_pad), 1)
        onehot = (col == ids).astype(jnp.bfloat16)                            # (Bp, NEp) bf16
        x = jnp.dot(onehot, emb_ref[...],
                    preferred_element_type=jnp.float32)                       # (Bp, E) f32

        # ---- bidirectional GRU, one timestep per layer ----
        # Packed K layout per layer:   [ x (I) | h_d0 (H) | h_d1 (H) ]
        # Packed N layout (8H = 256):  [ r_d0 r_d1 z_d0 z_d1 | n_x_d0 n_x_d1 | n_h_d0 n_h_d1 ]
        h0 = h0_ref[...]                                                      # (Bp, 2L*H) f32
        h_outs = []
        for l in range(num_layers):
            w_ref, b_ref = layer_refs[2 * l], layer_refs[2 * l + 1]
            h_cat = h0[:, l * 2 * H:(l + 1) * 2 * H]                          # (Bp, 2H) f32

            xk = jnp.concatenate([x, h_cat], axis=1).astype(jnp.bfloat16)     # (Bp, I+2H)
            g = jnp.dot(xk, w_ref[...],
                        preferred_element_type=jnp.float32) + b_ref[...]      # (Bp, 8H) f32

            rz = jax.nn.sigmoid(g[:, 0:4 * H])                                # one 128-lane tile
            r = rz[:, 0:2 * H]
            z = rz[:, 2 * H:4 * H]
            n = jnp.tanh(g[:, 4 * H:6 * H] + r * g[:, 6 * H:8 * H])
            h_new = n + z * (h_cat - n)                                       # (Bp, 2H)

            h_outs.append(h_new)
            x = h_new  # concat(dir0, dir1) feeds the next layer
            # TODO(synk): nn.GRU inter-layer dropout (training-mode, stochastic)
            # omitted; eval-mode semantics are reproduced exactly.

        # single lane-dense (Bp, 2L*H) unmasked store of the whole hidden slab
        hid_ref[...] = jnp.concatenate(h_outs, axis=1).astype(hid_ref.dtype)

        # ---- final Linear over concat(dir0, dir1) of the last layer ----
        # TODO(synk): at realistic vocab sizes, tile this FC over the (padded)
        # vocab dim with grid=(pl.cdiv(Vp, TILE_V),), dimension_semantics=
        # ("parallel",) so fc_w streams / shards across TensorCores (v7x).
        preds_ref[...] = (jnp.dot(x.astype(jnp.bfloat16), fcw_ref[...],
                                  preferred_element_type=jnp.float32)
                          + fcb_ref[...]).astype(preds_ref.dtype)

    return kernel


# --------------------------------- wrapper ---------------------------------

def decoder_forward(packed, captions, enc_hidden, num_layers):
    """captions: (B,) int32; enc_hidden: (2*num_layers, B, H).

    Returns (predictions (B, vocab), hidden (2*num_layers, B, H)) exactly like
    DecoderRNN.forward (the seq dim of size 1 is squeezed away).
    """
    embed = packed["embed"]
    num_embeddings_p, _E = embed.shape          # already padded to NEp rows
    num_embeddings = packed["num_embeddings"]
    vocab = packed["vocab"]
    vocab_p = packed["fc_w_t"].shape[-1]
    two_l, B, H = enc_hidden.shape
    assert two_l == 2 * num_layers

    Bp = _round_up(max(B, 8), 8)                # pad batch to the f32 sublane tile

    caps = jnp.clip(captions.astype(jnp.int32), 0, num_embeddings - 1)
    caps_p = jnp.zeros((Bp, 1), jnp.int32).at[:B, 0].set(caps)

    # (2L, B, H) -> lane-dense (Bp, 2L*H) slab, layer-major [l0d0 l0d1 l1d0 l1d1 ...]
    h0_slab = jnp.transpose(enc_hidden, (1, 0, 2)).reshape(B, 2 * num_layers * H)
    h0_slab = jnp.zeros((Bp, 2 * num_layers * H), jnp.float32).at[:B].set(
        h0_slab.astype(jnp.float32))

    inputs = [caps_p, embed, h0_slab]
    for l in range(num_layers):
        inputs.extend(packed["layers"][l])      # (w_pack bf16, b_pack f32)
    inputs.extend([packed["fc_w_t"], packed["fc_b"]])

    kernel = _make_decoder_kernel(num_layers, H, num_embeddings_p, Bp)
    preds_p, hid_p = pl.pallas_call(
        kernel,
        out_shape=(jax.ShapeDtypeStruct((Bp, vocab_p), jnp.float32),
                   jax.ShapeDtypeStruct((Bp, 2 * num_layers * H), jnp.float32)),
        # No grid / BlockSpecs: every operand is tiny and lives whole in VMEM,
        # so a single fused invocation is the right structure at these sizes.
    )(*inputs)

    preds = preds_p[:B, :vocab]
    hidden = jnp.transpose(hid_p[:B].reshape(B, 2 * num_layers, H), (1, 0, 2))
    return preds, hidden


# --------------------------- parameter init / packing ---------------------------

def init_params(key, num_embeddings, embedding_dim, hidden_size, num_layers, vocab_size):
    """Raw (unpacked) f32 params in PyTorch-equivalent, pre-transposed layout."""
    H = hidden_size
    k_gru = 1.0 / math.sqrt(H)
    k_fc = 1.0 / math.sqrt(2 * H)                 # nn.Linear fan_in = 2H
    keys = list(jax.random.split(key, 1 + num_layers * 2 * 4 + 2))
    it = iter(keys)

    def uni(k, shape, bound):
        return jax.random.uniform(k, shape, jnp.float32, -bound, bound)

    params = {
        "embed": jax.random.normal(next(it), (num_embeddings, embedding_dim), jnp.float32),
        "gru": [],
    }
    for l in range(num_layers):
        in_l = embedding_dim if l == 0 else 2 * H
        dirs = []
        for _d in range(2):                       # forward / backward directions
            dirs.append({
                "w_ih_t": uni(next(it), (3, in_l, H), k_gru),   # gates r, z, n
                "w_hh_t": uni(next(it), (3, H, H), k_gru),
                "b_ih":   uni(next(it), (3, 1, H), k_gru),
                "b_hh":   uni(next(it), (3, 1, H), k_gru),
            })
        params["gru"].append(dirs)
    params["fc_w_t"] = uni(next(it), (2 * H, vocab_size), k_fc)
    params["fc_b"] = uni(next(it), (1, vocab_size), k_fc)
    return params


def pack_params(raw, num_layers, hidden, embedding_dim):
    """Fused, gate- and direction-packed bf16 weights for the kernel.

    Per layer: ONE (I+2H, 8H) bf16 matrix whose K rows are [x | h_d0 | h_d1] and
    whose N columns are [r_d0 r_d1 z_d0 z_d1 | n_x_d0 n_x_d1 | n_h_d0 n_h_d1],
    plus ONE (1, 8H) f32 bias with b_ih+b_hh pre-summed for r/z.
    """
    H = hidden
    num_embeddings, E = raw["embed"].shape
    NEp = _round_up(num_embeddings, 128)

    embed_p = jnp.zeros((NEp, E), jnp.float32).at[:num_embeddings].set(raw["embed"])
    packed = {
        "embed": embed_p.astype(jnp.bfloat16),
        "num_embeddings": num_embeddings,
        "layers": [],
    }

    for l in range(num_layers):
        d0, d1 = raw["gru"][l]
        I = embedding_dim if l == 0 else 2 * H
        zHH = jnp.zeros((H, H), jnp.float32)
        zI2H = jnp.zeros((I, 2 * H), jnp.float32)

        # rows 0:I            -> x contribution
        top = jnp.concatenate([
            d0["w_ih_t"][0], d1["w_ih_t"][0],       # r columns
            d0["w_ih_t"][1], d1["w_ih_t"][1],       # z columns
            d0["w_ih_t"][2], d1["w_ih_t"][2],       # n (x-side) columns
            zI2H,                                   # n (h-side) columns -> zero
        ], axis=1)
        # rows I:I+H          -> h_dir0 contribution (block-diag per direction)
        mid = jnp.concatenate([
            d0["w_hh_t"][0], zHH,
            d0["w_hh_t"][1], zHH,
            zHH, zHH,
            d0["w_hh_t"][2], zHH,
        ], axis=1)
        # rows I+H:I+2H       -> h_dir1 contribution
        bot = jnp.concatenate([
            zHH, d1["w_hh_t"][0],
            zHH, d1["w_hh_t"][1],
            zHH, zHH,
            zHH, d1["w_hh_t"][2],
        ], axis=1)
        w = jnp.concatenate([top, mid, bot], axis=0).astype(jnp.bfloat16)   # (I+2H, 8H)

        b = jnp.concatenate([
            d0["b_ih"][0] + d0["b_hh"][0], d1["b_ih"][0] + d1["b_hh"][0],   # r
            d0["b_ih"][1] + d0["b_hh"][1], d1["b_ih"][1] + d1["b_hh"][1],   # z
            d0["b_ih"][2],                 d1["b_ih"][2],                   # n x-side
            d0["b_hh"][2],                 d1["b_hh"][2],                   # n h-side
        ], axis=-1).astype(jnp.float32)                                     # (1, 8H)
        packed["layers"].append((w, b))

    # FC padded to a 128-lane multiple on the vocab dim (unmasked preds store)
    vocab = raw["fc_w_t"].shape[-1]
    Vp = _round_up(vocab, 128)
    fcw = jnp.zeros((2 * H, Vp), jnp.float32).at[:, :vocab].set(raw["fc_w_t"])
    fcb = jnp.zeros((1, Vp), jnp.float32).at[:, :vocab].set(raw["fc_b"])
    packed["fc_w_t"] = fcw.astype(jnp.bfloat16)
    packed["fc_b"] = fcb
    packed["vocab"] = vocab
    return packed


# ------------------------------ pure-JAX reference ------------------------------

def reference_forward(raw, captions, enc_hidden, num_layers):
    x = raw["embed"][captions]
    new_hidden = []
    for l in range(num_layers):
        outs = []
        for d in range(2):
            p = raw["gru"][l][d]
            h = enc_hidden[2 * l + d]
            i_r = x @ p["w_ih_t"][0] + p["b_ih"][0]
            i_z = x @ p["w_ih_t"][1] + p["b_ih"][1]
            i_n = x @ p["w_ih_t"][2] + p["b_ih"][2]
            h_r = h @ p["w_hh_t"][0] + p["b_hh"][0]
            h_z = h @ p["w_hh_t"][1] + p["b_hh"][1]
            h_n = h @ p["w_hh_t"][2] + p["b_hh"][2]
            r = jax.nn.sigmoid(i_r + h_r)
            z = jax.nn.sigmoid(i_z + h_z)
            n = jnp.tanh(i_n + r * h_n)
            h1 = (1.0 - z) * n + z * h
            outs.append(h1)
            new_hidden.append(h1)
        x = jnp.concatenate(outs, axis=-1)
    preds = x @ raw["fc_w_t"] + raw["fc_b"]
    return preds, jnp.stack(new_hidden, axis=0)


# ----------------------------------- main -----------------------------------

if __name__ == "__main__":
    num_embeddings = 50
    embedding_dim = 32     # == GRU input_size
    hidden_size = 32
    num_layers = 2
    vocab_size = 64
    batch = 4

    root = jax.random.PRNGKey(0)
    kp, kc, kh = jax.random.split(root, 3)

    raw = init_params(kp, num_embeddings, embedding_dim, hidden_size, num_layers, vocab_size)
    packed = pack_params(raw, num_layers, hidden_size, embedding_dim)

    captions = jax.random.randint(kc, (batch,), 0, num_embeddings, dtype=jnp.int32)
    enc_hidden = jax.random.normal(kh, (2 * num_layers, batch, hidden_size), jnp.float32)

    preds, hidden = decoder_forward(packed, captions, enc_hidden, num_layers)
    jax.block_until_ready((preds, hidden))

    assert preds.shape == (batch, vocab_size)
    assert hidden.shape == (2 * num_layers, batch, hidden_size)

    preds_ref, hidden_ref = reference_forward(raw, captions, enc_hidden, num_layers)
    assert float(jnp.max(jnp.abs(preds - preds_ref))) < 5e-2, \
        f"preds err {float(jnp.max(jnp.abs(preds - preds_ref)))}"
    assert float(jnp.max(jnp.abs(hidden - hidden_ref))) < 5e-2, \
        f"hidden err {float(jnp.max(jnp.abs(hidden - hidden_ref)))}"

    print("KERNEL_OK")
</pallas_src>

<mosaic_0001>
module attributes {stable_mosaic.version = 11 : i64} {
  func.func @kernel(%arg0: memref<8x1xi32, #tpu.memory_space<vmem>>, %arg1: memref<128x32xbf16, #tpu.memory_space<vmem>>, %arg2: memref<8x128xf32, #tpu.memory_space<vmem>>, %arg3: memref<96x256xbf16, #tpu.memory_space<vmem>>, %arg4: memref<1x256xf32, #tpu.memory_space<vmem>>, %arg5: memref<128x256xbf16, #tpu.memory_space<vmem>>, %arg6: memref<1x256xf32, #tpu.memory_space<vmem>>, %arg7: memref<64x128xbf16, #tpu.memory_space<vmem>>, %arg8: memref<1x128xf32, #tpu.memory_space<vmem>>, %arg9: memref<8x128xf32, #tpu.memory_space<vmem>>, %arg10: memref<8x128xf32, #tpu.memory_space<vmem>>) attributes {dimension_semantics = [], scalar_prefetch = 0 : i64, scratch_operands = 0 : i64, tpu.core_type = #tpu.core_type<tc>} {
    %c0 = arith.constant 0 : index
    %c0_0 = arith.constant 0 : index
    %0 = vector.load %arg0[%c0, %c0_0] : memref<8x1xi32, #tpu.memory_space<vmem>>, vector<8x1xi32>
    %1 = tpu.iota {dimensions = array<i32: 1>} : vector<8x128xi32>
    %2 = vector.broadcast %0 : vector<8x1xi32> to vector<8x128xi32>
    %3 = arith.cmpi eq, %1, %2 : vector<8x128xi32>
    %4 = arith.extui %3 : vector<8x128xi1> to vector<8x128xi32>
    %5 = arith.sitofp %4 : vector<8x128xi32> to vector<8x128xf32>
    %6 = arith.truncf %5 : vector<8x128xf32> to vector<8x128xbf16>
    %c0_1 = arith.constant 0 : index
    %c0_2 = arith.constant 0 : index
    %7 = vector.load %arg1[%c0_1, %c0_2] : memref<128x32xbf16, #tpu.memory_space<vmem>>, vector<128x32xbf16>
    %cst = arith.constant dense<0.000000e+00> : vector<8x32xf32>
    %8 = tpu.matmul %6, %7, %cst {dimension_numbers = #tpu.dot_dimension_numbers<[1], [0], [0], [1], [0, 0, 1, 1], [], []>} : vector<8x128xbf16>, vector<128x32xbf16>, vector<8x32xf32> -> vector<8x32xf32>
    %c0_3 = arith.constant 0 : index
    %c0_4 = arith.constant 0 : index
    %9 = vector.load %arg2[%c0_3, %c0_4] : memref<8x128xf32, #tpu.memory_space<vmem>>, vector<8x128xf32>
    %10 = vector.extract_strided_slice %9 {offsets = [0, 0], sizes = [8, 64], strides = [1, 1]} : vector<8x128xf32> to vector<8x64xf32>
    %11 = tpu.concatenate %8, %10 in 1 : vector<8x32xf32>, vector<8x64xf32> -> vector<8x96xf32>
    %12 = arith.truncf %11 : vector<8x96xf32> to vector<8x96xbf16>
    %c0_5 = arith.constant 0 : index
    %c0_6 = arith.constant 0 : index
    %13 = vector.load %arg3[%c0_5, %c0_6] : memref<96x256xbf16, #tpu.memory_space<vmem>>, vector<96x256xbf16>
    %cst_7 = arith.constant dense<0.000000e+00> : vector<8x256xf32>
    %14 = tpu.matmul %12, %13, %cst_7 {dimension_numbers = #tpu.dot_dimension_numbers<[1], [0], [0], [1], [0, 0, 1, 1], [], []>} : vector<8x96xbf16>, vector<96x256xbf16>, vector<8x256xf32> -> vector<8x256xf32>
    %c0_8 = arith.constant 0 : index
    %c0_9 = arith.constant 0 : index
    %15 = vector.load %arg4[%c0_8, %c0_9] : memref<1x256xf32, #tpu.memory_space<vmem>>, vector<1x256xf32>
    %16 = vector.broadcast %15 : vector<1x256xf32> to vector<8x256xf32>
    %17 = arith.addf %14, %16 : vector<8x256xf32>
    %18 = vector.extract_strided_slice %17 {offsets = [0, 0], sizes = [8, 128], strides = [1, 1]} : vector<8x256xf32> to vector<8x128xf32>
    %19 = arith.negf %18 : vector<8x128xf32>
    %20 = math.exp %19 : vector<8x128xf32>
    %cst_10 = arith.constant 1.000000e+00 : f32
    %21 = vector.broadcast %cst_10 : f32 to vector<8x128xf32>
    %22 = arith.addf %21, %20 : vector<8x128xf32>
    %23 = arith.divf %21, %22 : vector<8x128xf32>
    %24 = vector.extract_strided_slice %23 {offsets = [0, 0], sizes = [8, 64], strides = [1, 1]} : vector<8x128xf32> to vector<8x64xf32>
    %25 = vector.extract_strided_slice %23 {offsets = [0, 64], sizes = [8, 64], strides = [1, 1]} : vector<8x128xf32> to vector<8x64xf32>
    %26 = vector.extract_strided_slice %17 {offsets = [0, 128], sizes = [8, 64], strides = [1, 1]} : vector<8x256xf32> to vector<8x64xf32>
    %27 = vector.extract_strided_slice %17 {offsets = [0, 192], sizes = [8, 64], strides = [1, 1]} : vector<8x256xf32> to vector<8x64xf32>
    %28 = arith.mulf %24, %27 : vector<8x64xf32>
    %29 = arith.addf %26, %28 : vector<8x64xf32>
    %30 = math.tanh %29 : vector<8x64xf32>
    %31 = arith.subf %10, %30 : vector<8x64xf32>
    %32 = arith.mulf %25, %31 : vector<8x64xf32>
    %33 = arith.addf %30, %32 : vector<8x64xf32>
    %34 = vector.extract_strided_slice %9 {offsets = [0, 64], sizes = [8, 64], strides = [1, 1]} : vector<8x128xf32> to vector<8x64xf32>
    %35 = tpu.concatenate %33, %34 in 1 : vector<8x64xf32>, vector<8x64xf32> -> vector<8x128xf32>
    %36 = arith.truncf %35 : vector<8x128xf32> to vector<8x128xbf16>
    %c0_11 = arith.constant 0 : index
    %c0_12 = arith.constant 0 : index
    %37 = vector.load %arg5[%c0_11, %c0_12] : memref<128x256xbf16, #tpu.memory_space<vmem>>, vector<128x256xbf16>
    %cst_13 = arith.constant dense<0.000000e+00> : vector<8x256xf32>
    %38 = tpu.matmul %36, %37, %cst_13 {dimension_numbers = #tpu.dot_dimension_numbers<[1], [0], [0], [1], [0, 0, 1, 1], [], []>} : vector<8x128xbf16>, vector<128x256xbf16>, vector<8x256xf32> -> vector<8x256xf32>
    %c0_14 = arith.constant 0 : index
    %c0_15 = arith.constant 0 : index
    %39 = vector.load %arg6[%c0_14, %c0_15] : memref<1x256xf32, #tpu.memory_space<vmem>>, vector<1x256xf32>
    %40 = vector.broadcast %39 : vector<1x256xf32> to vector<8x256xf32>
    %41 = arith.addf %38, %40 : vector<8x256xf32>
    %42 = vector.extract_strided_slice %41 {offsets = [0, 0], sizes = [8, 128], strides = [1, 1]} : vector<8x256xf32> to vector<8x128xf32>
    %43 = arith.negf %42 : vector<8x128xf32>
    %44 = math.exp %43 : vector<8x128xf32>
    %cst_16 = arith.constant 1.000000e+00 : f32
    %45 = vector.broadcast %cst_16 : f32 to vector<8x128xf32>
    %46 = arith.addf %45, %44 : vector<8x128xf32>
    %47 = arith.divf %45, %46 : vector<8x128xf32>
    %48 = vector.extract_strided_slice %47 {offsets = [0, 0], sizes = [8, 64], strides = [1, 1]} : vector<8x128xf32> to vector<8x64xf32>
    %49 = vector.extract_strided_slice %47 {offsets = [0, 64], sizes = [8, 64], strides = [1, 1]} : vector<8x128xf32> to vector<8x64xf32>
    %50 = vector.extract_strided_slice %41 {offsets = [0, 128], sizes = [8, 64], strides = [1, 1]} : vector<8x256xf32> to vector<8x64xf32>
    %51 = vector.extract_strided_slice %41 {offsets = [0, 192], sizes = [8, 64], strides = [1, 1]} : vector<8x256xf32> to vector<8x64xf32>
    %52 = arith.mulf %48, %51 : vector<8x64xf32>
    %53 = arith.addf %50, %52 : vector<8x64xf32>
    %54 = math.tanh %53 : vector<8x64xf32>
    %55 = arith.subf %34, %54 : vector<8x64xf32>
    %56 = arith.mulf %49, %55 : vector<8x64xf32>
    %57 = arith.addf %54, %56 : vector<8x64xf32>
    %58 = tpu.concatenate %33, %57 in 1 : vector<8x64xf32>, vector<8x64xf32> -> vector<8x128xf32>
    %c0_17 = arith.constant 0 : index
    %c0_18 = arith.constant 0 : index
    %59 = vector.load %arg10[%c0_17, %c0_18] : memref<8x128xf32, #tpu.memory_space<vmem>>, vector<8x128xf32>
    tpu.vector_store %arg10[%c0_17, %c0_18], %58 {strides = array<i32>} : memref<8x128xf32, #tpu.memory_space<vmem>>, vector<8x128xf32>,
    %60 = arith.truncf %57 : vector<8x64xf32> to vector<8x64xbf16>
    %c0_19 = arith.constant 0 : index
    %c0_20 = arith.constant 0 : index
    %61 = vector.load %arg7[%c0_19, %c0_20] : memref<64x128xbf16, #tpu.memory_space<vmem>>, vector<64x128xbf16>
    %cst_21 = arith.constant dense<0.000000e+00> : vector<8x128xf32>
    %62 = tpu.matmul %60, %61, %cst_21 {dimension_numbers = #tpu.dot_dimension_numbers<[1], [0], [0], [1], [0, 0, 1, 1], [], []>} : vector<8x64xbf16>, vector<64x128xbf16>, vector<8x128xf32> -> vector<8x128xf32>
    %c0_22 = arith.constant 0 : index
    %c0_23 = arith.constant 0 : index
    %63 = vector.load %arg8[%c0_22, %c0_23] : memref<1x128xf32, #tpu.memory_space<vmem>>, vector<1x128xf32>
    %64 = vector.broadcast %63 : vector<1x128xf32> to vector<8x128xf32>
    %65 = arith.addf %62, %64 : vector<8x128xf32>
    %c0_24 = arith.constant 0 : index
    %c0_25 = arith.constant 0 : index
    %66 = vector.load %arg9[%c0_24, %c0_25] : memref<8x128xf32, #tpu.memory_space<vmem>>, vector<8x128xf32>
    tpu.vector_store %arg9[%c0_24, %c0_25], %65 {strides = array<i32>} : memref<8x128xf32, #tpu.memory_space<vmem>>, vector<8x128xf32>,
    return
  }
}

</mosaic_0001>

<bundles_post_ra>
// kernel: tpu_custom_call.1
= control target key start
LH: loop header
LB: loop body
LE: loop exit
PB: predicated region body
PF: predicated region fallthrough
CT: control target
= control target key end

     0   :  { %16 = vsyncpa [#allocation3], 0  ;;  %s1074_s0 = inlined_call_operand.vmem [shape: s32[8,1], index: 0, kind: input, shape index: {}]   ;;  %s1075_s1 = inlined_call_operand.vmem [shape: bf16[128,32], index: 1, kind: input, shape index: {}]   ;;  %s1076_s2 = inlined_call_operand.vmem [shape: f32[8,128], index: 2, kind: input, shape index: {}]   ;;  %s1077_s3 = inlined_call_operand.hbm [shape: bf16[96,256], index: 3, kind: input, shape index: {}]   ;;  %s1078_s4 = inlined_call_operand.vmem [shape: f32[1,256], index: 4, kind: input, shape index: {}]   ;;  %s1079_s5 = inlined_call_operand.hbm [shape: bf16[128,256], index: 5, kind: input, shape index: {}]   ;;  %s1080_s6 = inlined_call_operand.vmem [shape: f32[1,256], index: 6, kind: input, shape index: {}]   ;;  %s1081_s7 = inlined_call_operand.vmem [shape: bf16[64,128], index: 7, kind: input, shape index: {}]   ;;  %s1082_s8 = inlined_call_operand.vmem [shape: f32[1,128], index: 8, kind: input, shape index: {}]   ;;  %s1083_s9 = inlined_call_operand.hbm [shape: f32[8,128], index: 9, kind: output, shape index: {0}]   ;;  %s1084_s10 = inlined_call_operand.hbm [shape: f32[8,128], index: 10, kind: output, shape index: {1}]  }
   0x1   :  { %17 = vsyncpa [#allocation6], 0 }
   0x2   :  { %18 = vsyncpa [#allocation4], 0 }
   0x3   :  { %19 = vsyncpa [#allocation9], 0  ;;  %s897_s13 = smov [#allocation2]  }
   0x4   :  { %s31_s14 = sshll.u32 %s897_s13, 4  ;;  %s32_s14 = int_to_ptr.vmem [resolvable:$true] %s31_s14 }
   0x5   :  { %s817_s15 = scalar_lea.vmem %s32_s14, 1536  ;;  %p822_p1 = scmp.lt.s32.totalorder %s32_s14, %s32_s14 }
   0x6   :  { %p818_p0 = scmp.ne.s32.totalorder %s32_s14, %s817_s15  ;;  %p823_p2 = scmp.lt.s32.totalorder %s817_s15, %s817_s15 }
   0x8   :  { %p824_p3 = por %p823_p2, %p822_p1 }
   0xa   :  { %p825_p4 = pnand %p824_p3, %p818_p0 }
   0xc   :  { %828 = shalt.err (!%p825_p4)
}
   0xd   :  { %s898_s16 = smov 128   ;;  %s899_s17 = smov 8  }
   0xe   :  { %37 = dma.hbm_to_vmem [thread:$0]  %s1077_s3, 1536, %s32_s14, [#allocation3], %s898_s16, %s898_s16, %s899_s17  }
   0xf   :  { %s900_s20 = smov [#allocation5]  }
  0x10   :  { %s45_s21 = sshll.u32 %s900_s20, 4  ;;  %s46_s21 = int_to_ptr.vmem [resolvable:$true] %s45_s21 }
  0x11   :  { %s837_s22 = scalar_lea.vmem %s46_s21, 2048  ;;  %p842_p6 = scmp.lt.s32.totalorder %s46_s21, %s46_s21 }
  0x12   :  { %p838_p5 = scmp.ne.s32.totalorder %s46_s21, %s837_s22  ;;  %p843_p7 = scmp.lt.s32.totalorder %s837_s22, %s837_s22 }
  0x14   :  { %p844_p8 = por %p843_p7, %p842_p6 }
  0x16   :  { %p845_p9 = pnand %p844_p8, %p838_p5 }
  0x18   :  { %848 = shalt.err (!%p845_p9)
}
  0x19   :  { %51 = dma.hbm_to_vmem [thread:$0]  %s1079_s5, 2048, %s46_s21, [#allocation6], %s898_s16, %s898_s16, %s899_s17  }
  0x1a   :  { %889 = dma.done.wait [#allocation3], 1536  }
  0x1b   :  { %890 = vsyncadd [#allocation3], 4294965760 }
  0x1c   :  { %891 = dma.done.wait [#allocation6], 2048  }
  0x1d   :  { %892 = vsyncadd [#allocation6], 4294965248  ;;  %v901_v0 = vmov 0   ;;  %v902_v1 = vmov 0.0   ;;  %vm903_vm0 = vmmov 0   ;;  %v65_v2 = vld [vmem:[%s1074_s0] sm:$0xff]  ;;  %v66_v22 = vlaneseq }
  0x1e   :  { %742 = vset.pattern.permute.xlu0 %v901_v0  ;;  %698 = vmatprep.subr.bf16.mxu0 %v902_v1  ;;  %v743_v3 = vld [vmem:[%s1075_s1 + $0x38] sm:$0xff]   ;;  %v744_v4 = vld [vmem:[%s1075_s1 + $0x30] sm:$0xff]   ;;  %v745_v5 = vld [vmem:[%s1075_s1 + $0x28] sm:$0xff]   ;;  %s904_s12 = smov 32   ;;  %v905_v25 = vmov 1.0|1.0  }
  0x1f   :  { %307 = vmatprep.mubr.bf16.mxu1 %v901_v0  ;;  %714 = vmatprep.mubr.msk.bf16.mxu0 %vm903_vm0, %v902_v1  ;;  %v992_v6 = vld [vmem:[%s1076_s2] sm:$0xff]  ;;  %v751_v7 = vld [vmem:[#allocation2 + $0x54] ss:$8 sps:$4 sm:$0xff]   ;;  %v753_v8 = vld [vmem:[#allocation2 + $0x50] ss:$8 sps:$4 sm:$0xff]   ;;  %v67_v23 = vand.u32 127, %v66_v22 }
  0x20   :  { %69 = vperm.xlu0 %742, %v65_v2   ;;  %699 = vmatpush3.bf16.msra.mxu0 %v743_v3  ;;  %v754_v9 = vld [vmem:[#allocation2 + $0x44] ss:$8 sps:$4 sm:$0xff]   ;;  %v756_v11 = vld [vmem:[#allocation2 + $0x40] ss:$8 sps:$4 sm:$0xff]   ;;  %v747_v12 = vld [vmem:[%s1075_s1 + $0x18] sm:$0xff]   ;;  %vm184_vm3 = vcmask 261120  }
  0x21   :  { %700 = vmatprep.subr.bf16.mxu0 %v902_v1  ;;  %v746_v10 = vld [vmem:[%s1075_s1 + $0x20] sm:$0xff]   ;;  %279 = vmatprep.subr.bf16.mxu1 %v751_v7  ;;  %v757_v13 = vld [vmem:[#allocation2 + $0x34] ss:$8 sps:$4 sm:$0xff]   ;;  %v759_v14 = vld [vmem:[#allocation2 + $0x30] ss:$8 sps:$4 sm:$0xff]   ;;  %vm271_vm4 = vcmask 785408  }
  0x22   :  { %280 = vmatpush1.bf16.msra.mxu1 %v753_v8  ;;  %v760_v15 = vld [vmem:[#allocation2 + $0x24] ss:$8 sps:$4 sm:$0xff]   ;;  %v748_v16 = vld [vmem:[%s1075_s1 + $0x10] sm:$0xff]   ;;  %v762_v17 = vld [vmem:[#allocation2 + $0x20] ss:$8 sps:$4 sm:$0xff]   ;;  %v1019_v35 = vshrl.u32 %v66_v22, 7 }
  0x23   :  { %281 = vmatprep.subr.bf16.mxu1 %v754_v9  ;;  %v763_v18 = vld [vmem:[#allocation2 + $0x14] ss:$8 sps:$4 sm:$0xff]   ;;  %v749_v19 = vld [vmem:[%s1075_s1 + $0x8] sm:$0xff]   ;;  %v765_v20 = vld [vmem:[#allocation2 + $0x10] ss:$8 sps:$4 sm:$0xff]   ;;  %s906_s23 = smov 64  }
  0x24   :  { %701 = vmatpush3.bf16.msra.mxu0 %v744_v4  ;;  %181 = vrot.lane.b32.xlu0 %v992_v6, %s904_s12  ;;  %v750_v21 = vld [vmem:[%s1075_s1] sm:$0xff]   ;;  %v207_v36 = vsub.s32 1, %v1019_v35  ;;  %v203_v44 = vsub.s32 0, %v1019_v35  ;;  %v769_v54 = vld [vmem:[#allocation5 + $0x70] ss:$8 sps:$4 sm:$0xff]   ;;  %vm340_vm5 = vcmask 523264  }
  0x25   :  { %702 = vmatprep.subr.bf16.mxu0 %v902_v1  ;;  %v766_v26 = vld [vmem:[#allocation2 + $0x4] ss:$8 sps:$4 sm:$0xff]   ;;  %v768_v27 = vld [vmem:[#allocation2] ss:$8 sps:$4 sm:$0xff]   ;;  %v771_v55 = vld [vmem:[#allocation5 + $0x74] ss:$8 sps:$4 sm:$0xff]  }
  0x26   :  { %282 = vmatpush1.bf16.msra.mxu1 %v756_v11  ;;  %v199_v37 = vld [vmem:[%s1078_s4] sm:$0x3]  ;;  %v774_v56 = vld [vmem:[#allocation5 + $0x64] ss:$8 sps:$4 sm:$0xff]   ;;  %v777_v58 = vld [vmem:[#allocation5 + $0x54] ss:$8 sps:$4 sm:$0xff]  }
  0x27   :  { %283 = vmatprep.subr.bf16.mxu1 %v757_v13  ;;  %v208_v38 = vrot.slane %v199_v37, %v207_v36  ;;  %v204_v45 = vrot.slane %v199_v37, %v203_v44  ;;  %v772_v57 = vld [vmem:[#allocation5 + $0x60] ss:$8 sps:$4 sm:$0xff]   ;;  %v775_v59 = vld [vmem:[#allocation5 + $0x50] ss:$8 sps:$4 sm:$0xff]   ;;  %v780_v61 = vld [vmem:[#allocation5 + $0x44] ss:$8 sps:$4 sm:$0xff]  }
  0x28   :  { %703 = vmatpush3.bf16.msra.mxu0 %v745_v5  ;;  %v778_v63 = vld [vmem:[#allocation5 + $0x40] ss:$8 sps:$4 sm:$0xff]   ;;  %v781_v2 = vld [vmem:[#allocation5 + $0x30] ss:$8 sps:$4 sm:$0xff]   ;;  %v786_v3 = vld [vmem:[#allocation5 + $0x24] ss:$8 sps:$4 sm:$0xff]  }
  0x29   :  { %704 = vmatprep.subr.bf16.mxu0 %v902_v1  ;;  %v784_v4 = vld [vmem:[#allocation5 + $0x20] ss:$8 sps:$4 sm:$0xff]   ;;  %v789_v5 = vld [vmem:[#allocation5 + $0x14] ss:$8 sps:$4 sm:$0xff]   ;;  %v787_v7 = vld [vmem:[#allocation5 + $0x10] ss:$8 sps:$4 sm:$0xff]  }
  0x2a   :  { %284 = vmatpush1.bf16.msra.mxu1 %v759_v14  ;;  %v792_v8 = vld [vmem:[#allocation5 + $0x4] ss:$8 sps:$4 sm:$0xff]   ;;  %v790_v9 = vld [vmem:[#allocation5] ss:$8 sps:$4 sm:$0xff]   ;;  %s907_s30 = smov [#allocation8]  }
  0x2b   :  { %285 = vmatprep.subr.bf16.mxu1 %v760_v15  ;;  %s622_s0 = sshll.u32 %s907_s30, 4  ;;  %s623_s0 = int_to_ptr.vmem [resolvable:$true] %s622_s0 }
  0x2c   :  { %705 = vmatpush3.bf16.msra.mxu0 %v746_v10  ;;  %p854_p11 = scmp.lt.s32.totalorder %s623_s0, %s623_s0 }
  0x2d   :  { %706 = vmatprep.subr.bf16.mxu0 %v902_v1 }
  0x2e   :  { %286 = vmatpush1.bf16.msra.mxu1 %v762_v17 }
  0x2f   :  { %287 = vmatprep.subr.bf16.mxu1 %v763_v18 }
  0x30   :  { %707 = vmatpush3.bf16.msra.mxu0 %v747_v12 }
  0x31   :  { %708 = vmatprep.subr.bf16.mxu0 %v902_v1 }
  0x32   :  { %288 = vmatpush1.bf16.msra.mxu1 %v765_v20 }
  0x33   :  { %289 = vmatprep.subr.bf16.mxu1 %v766_v26 }
  0x34   :  { %709 = vmatpush3.bf16.msra.mxu0 %v748_v16  ;;  %v359_v16 = vld [vmem:[%s1080_s6] sm:$0x3] }
  0x35   :  { %710 = vmatprep.subr.bf16.mxu0 %v902_v1  ;;  %v368_v17 = vrot.slane %v359_v16, %v207_v36  ;;  %v796_v36 = vld [vmem:[%s1081_s7] sm:$0xff]  }
  0x36   :  { %290 = vmatpush1.bf16.msra.mxu1 %v768_v27 }
  0x37   :  { %451 = vmatprep.subr.bf16.mxu1 %v771_v55 }
  0x38   :  { %711 = vmatpush3.bf16.msra.mxu0 %v749_v19 }
  0x39   :  { %712 = vmatprep.subr.bf16.mxu0 %v902_v1 }
  0x3c   :  { %713 = vmatpush3.bf16.msra.mxu0 %v750_v21 }
  0x3d   :  { %718 = vmatprep.subr.bf16.mxu0 %v902_v1 }
  0x9b   :  { %v70_v24 = vpop.permute.xlu0 %69 }
  0x9c   :  { %vm71_vm1 = vcmp.eq.s32.totalorder %v67_v23, %v70_v24  ;;  %v364_v23 = vrot.slane %v359_v16, %v203_v44 }
  0x9d   :  { %vm645_vm2 = vmpackc.low %vm71_vm1, %vm71_vm1 }
  0x9e   :  { %715 = vmatmul.mubr.msk.bf16.vlgmr.msra.gmra.mxu0 %vm645_vm2, %v905_v25 }
  0x9f   :  { %726 = vmatprep.mubr.msk.bf16.mxu0 %vm903_vm0, %v902_v1  ;;  %v182_v28 = vpop.permute.xlu0 %181 }
 0x15e   :  { %v173_v29 = vpop.f32.mrf.mxu0 }
 0x15f   :  { %v185_v30 = vsel %vm184_vm3, %v173_v29, %v182_v28 }
 0x160   :  { %v186_v31 = vpack.c.bf16 %v185_v30, %v185_v30  ;;  %v716_v32 = vpop.f32.mrf.mxu0 }
 0x161   :  { %v793_v32 = vld [vmem:[%s1081_s7 + $0x18] sm:$0xff]  }
 0x162   :  { %v176_v33 = vpop.f32.mrf.mxu0  ;;  %659 = vmatmul.mubr.msk.bf16.vlgmr.msra.gmra.mxu1 %vm271_vm4, %v186_v31  ;;  %719 = vmatpush3.bf16.msra.mxu0 %v793_v32 }
 0x163   :  { %483 = vmatprep.mubr.bf16.mxu1 %v901_v0  ;;  %452 = vmatpush1.bf16.msra.mxu1 %v769_v54  ;;  %v783_v0 = vld [vmem:[#allocation5 + $0x34] ss:$8 sps:$4 sm:$0xff]  }
 0x164   :  { %v717_v34 = vpop.f32.mrf.mxu0  ;;  %453 = vmatprep.subr.bf16.mxu1 %v774_v56  ;;  %v794_v33 = vld [vmem:[%s1081_s7 + $0x10] sm:$0xff]   ;;  %720 = vmatprep.subr.bf16.mxu0 %v902_v1 }
 0x165   :  { %v795_v34 = vld [vmem:[%s1081_s7 + $0x8] sm:$0xff]   ;;  %s849_s7 = scalar_lea.vmem %s623_s0, 128 }
 0x166   :  { %721 = vmatpush3.bf16.msra.mxu0 %v794_v33  ;;  %p850_p10 = scmp.ne.s32.totalorder %s623_s0, %s849_s7  ;;  %p855_p12 = scmp.lt.s32.totalorder %s849_s7, %s849_s7 }
 0x167   :  { %454 = vmatpush1.bf16.msra.mxu1 %v772_v57  ;;  %722 = vmatprep.subr.bf16.mxu0 %v902_v1 }
 0x168   :  { %455 = vmatprep.subr.bf16.mxu1 %v777_v58  ;;  %p856_p13 = por %p855_p12, %p854_p11 }
 0x16a   :  { %723 = vmatpush3.bf16.msra.mxu0 %v795_v34  ;;  %p857_p0 = pnand %p856_p13, %p850_p10 }
 0x16b   :  { %456 = vmatpush1.bf16.msra.mxu1 %v775_v59  ;;  %724 = vmatprep.subr.bf16.mxu0 %v902_v1 }
 0x16c   :  { %457 = vmatprep.subr.bf16.mxu1 %v780_v61 }
 0x16e   :  { %725 = vmatpush3.bf16.msra.mxu0 %v796_v36 }
 0x16f   :  { %458 = vmatpush1.bf16.msra.mxu1 %v778_v63 }
 0x170   :  { %459 = vmatprep.subr.bf16.mxu1 %v783_v0 }
 0x173   :  { %460 = vmatpush1.bf16.msra.mxu1 %v781_v2 }
 0x174   :  { %461 = vmatprep.subr.bf16.mxu1 %v786_v3 }
 0x177   :  { %462 = vmatpush1.bf16.msra.mxu1 %v784_v4 }
 0x178   :  { %463 = vmatprep.subr.bf16.mxu1 %v789_v5 }
 0x17b   :  { %464 = vmatpush1.bf16.msra.mxu1 %v787_v7 }
 0x17c   :  { %465 = vmatprep.subr.bf16.mxu1 %v792_v8 }
 0x17f   :  { %466 = vmatpush1.bf16.msra.mxu1 %v790_v9 }
 0x222   :  { %v309_v39 = vpop.f32.mrf.mxu1 }
 0x223   :  { %v310_v46 = vadd.f32 %v309_v39, %v204_v45 }
 0x224   :  { %v311_v40 = vpop.f32.mrf.mxu1 }
 0x225   :  { %v312_v41 = vadd.f32 %v311_v40, %v208_v38  ;;  %v660_v47 = vmul.f32 -1.442695, %v310_v46 }
 0x226   :  { %v313_v42 = vpop.f32.mrf.mxu1 }
 0x227   :  { %323 = vrot.lane.b32.xlu1 %v312_v41, %s906_s23  ;;  %797 = vpow2.f32 %v660_v47 }
 0x228   :  { %v314_v43 = vpop.f32.mrf.mxu1 }
 0x234   :  { %v798_v48 = vpop.eup %797 }
 0x235   :  { %v319_v49 = vadd.f32 1.0, %v798_v48 }
 0x237   :  { %799 = vrcp.f32 %v319_v49 }
 0x244   :  { %v800_v50 = vpop.eup %799 }
 0x299   :  { %v324_v51 = vpop.permute.xlu1 %323 }
 0x29a   :  { %v326_v52 = vmul.f32 %v800_v50, %v324_v51 }
 0x29c   :  { %v327_v53 = vadd.f32 %v326_v52, %v312_v41 }
 0x29e   :  { %801 = vtanh.f32 %v327_v53 }
 0x2ab   :  { %v802_v60 = vpop.eup %801 }
 0x2ac   :  { %v329_v62 = vsub.f32 %v992_v6, %v802_v60 }
 0x2ae   :  { %331 = vrot.lane.b32.xlu1 %v329_v62, %s906_s23 }
 0x320   :  { %v332_v10 = vpop.permute.xlu1 %331 }
 0x321   :  { %v334_v11 = vmul.f32 %v800_v50, %v332_v10 }
 0x323   :  { %336 = vrot.lane.b32.xlu0 %v334_v11, %s906_s23 }
 0x395   :  { %v337_v12 = vpop.permute.xlu0 %336 }
 0x396   :  { %v339_v13 = vadd.f32 %v802_v60, %v337_v12 }
 0x398   :  { %v341_v14 = vsel %vm340_vm5, %v339_v13, %v992_v6 }
 0x399   :  { %v342_v15 = vpack.c.bf16 %v341_v14, %v341_v14 }
 0x39b   :  { %484 = vmatmul.mubr.bf16.vlgmr.msra.gmra.mxu1 %v342_v15 }
 0x45b   :  { %v485_v18 = vpop.f32.mrf.mxu1 }
 0x45c   :  { %v486_v24 = vadd.f32 %v485_v18, %v364_v23 }
 0x45d   :  { %v487_v19 = vpop.f32.mrf.mxu1 }
 0x45e   :  { %v488_v20 = vadd.f32 %v487_v19, %v368_v17  ;;  %v677_v25 = vmul.f32 -1.442695, %v486_v24 }
 0x45f   :  { %v489_v21 = vpop.f32.mrf.mxu1 }
 0x460   :  { %499 = vrot.lane.b32.xlu1 %v488_v20, %s906_s23  ;;  %803 = vpow2.f32 %v677_v25 }
 0x461   :  { %v490_v22 = vpop.f32.mrf.mxu1 }
 0x46d   :  { %v804_v26 = vpop.eup %803 }
 0x46e   :  { %v495_v27 = vadd.f32 1.0, %v804_v26 }
 0x470   :  { %805 = vrcp.f32 %v495_v27 }
 0x47d   :  { %v806_v28 = vpop.eup %805 }
 0x4d2   :  { %v500_v29 = vpop.permute.xlu1 %499 }
 0x4d3   :  { %v502_v30 = vmul.f32 %v806_v28, %v500_v29 }
 0x4d5   :  { %v503_v31 = vadd.f32 %v502_v30, %v488_v20 }
 0x4d7   :  { %807 = vtanh.f32 %v503_v31 }
 0x4e4   :  { %v808_v35 = vpop.eup %807 }
 0x4e5   :  { %506 = vrot.lane.b32.xlu0 %v808_v35, %s906_s23 }
 0x557   :  { %v507_v37 = vpop.permute.xlu0 %506 }
 0x558   :  { %v509_v38 = vsub.f32 %v992_v6, %v507_v37 }
 0x55a   :  { %v510_v39 = vmul.f32 %v806_v28, %v509_v38 }
 0x55c   :  { %512 = vrot.lane.b32.xlu1 %v510_v39, %s906_s23 }
 0x5ce   :  { %v513_v40 = vpop.permute.xlu1 %512 }
 0x5cf   :  { %v515_v41 = vadd.f32 %v808_v35, %v513_v40 }
 0x5d1   :  { %v522_v42 = vpack.c.bf16 %v515_v41, %v515_v41  ;;  %517 = vrot.lane.b32.xlu0 %v515_v41, %s906_s23 }
 0x5d3   :  { %727 = vmatmul.mubr.msk.bf16.vlgmr.msra.gmra.mxu0 %vm340_vm5, %v522_v42 }
 0x643   :  { %v518_v1 = vpop.permute.xlu0 %517 }
 0x644   :  { %v520_v43 = vsel %vm340_vm5, %v339_v13, %v518_v1 }
 0x645   :  { %521 = vst [vmem:[#allocation8] sm:$0xff] %v520_v43 }
 0x646   :  { %860 = shalt.err (!%p857_p0)
}
 0x647   :  { %625 = dma.vmem_to_hbm [thread:$0]  %s623_s0, 128, %s1084_s10, [#allocation9]   ;;  %v678_v6 = vld [vmem:[%s1082_s8] ss:$0 sm:$0xff] }
 0x648   :  { %s908_s15 = smov [#allocation7]  }
 0x649   :  { %s612_s16 = sshll.u32 %s908_s15, 4  ;;  %s613_s16 = int_to_ptr.vmem [resolvable:$true] %s612_s16 }
 0x64a   :  { %s869_s2 = scalar_lea.vmem %s613_s16, 128  ;;  %p874_p2 = scmp.lt.s32.totalorder %s613_s16, %s613_s16 }
 0x64b   :  { %p870_p1 = scmp.ne.s32.totalorder %s613_s16, %s869_s2  ;;  %p875_p3 = scmp.lt.s32.totalorder %s869_s2, %s869_s2 }
 0x64d   :  { %p876_p4 = por %p875_p3, %p874_p2 }
 0x64f   :  { %p877_p5 = pnand %p876_p4, %p870_p1 }
 0x693   :  { %v599_v44 = vpop.f32.mrf.mxu0 }
 0x694   :  { %v600_v45 = vadd.f32 %v678_v6, %v599_v44 }
 0x695   :  { %v728_v46 = vpop.f32.mrf.mxu0 }
 0x696   :  { %605 = vst [vmem:[#allocation7] sm:$0xff] %v600_v45 }
 0x697   :  { %v602_v47 = vpop.f32.mrf.mxu0 }
 0x698   :  { %880 = shalt.err (!%p877_p5)
}
 0x699   :  { %615 = dma.vmem_to_hbm [thread:$0]  %s613_s16, 128, %s1083_s9, [#allocation4]   ;;  %v729_v48 = vpop.f32.mrf.mxu0 }
 0x69a   :  { %893 = dma.done.wait [#allocation4], 128  }
 0x69b   :  { %894 = vsyncadd [#allocation4], 4294967168 }
 0x69c   :  { %895 = dma.done.wait [#allocation9], 128  }
 0x69d   :  { %896 = vsyncadd [#allocation9], 4294967168 }
 0x69e   :  { %632 = vsyncpa [#allocation3], 1 }
 0x69f   :  { %633 = vsyncpa [#allocation6], 1 }
 0x6a0   :  { %634 = vsyncpa [#allocation4], 1 }
 0x6a1   :  { %635 = vsyncpa [#allocation9], 1 }

</bundles_post_ra>
